<compile_context>
chip_gen: v6e
topology: v6e:2x2x1
jax: 0.10.0
libtpu: 0.0.40
codegen_flags: <defaults>
</compile_context>

<pallas_src>
import functools

import numpy as np
import jax
import jax.numpy as jnp
from jax.experimental import pallas as pl
from jax.experimental.pallas import tpu as pltpu


def _round_up(v: int, m: int) -> int:
    return ((v + m - 1) // m) * m


# ---------------------------------------------------------------------------
# Kernels
# ---------------------------------------------------------------------------
def _dense_block_kernel_single_k(x_ref, w_ref, b_ref, o_ref, *, scale):
    """K fits in one tile: single matmul -> wscale -> bias -> leaky relu."""
    y = jnp.dot(x_ref[...], w_ref[...], preferred_element_type=jnp.float32)
    y = y * scale + b_ref[...]                       # b_ref is (1, TILE_N) f32
    o_ref[...] = jnp.where(y >= 0.0, y, 0.2 * y).astype(o_ref.dtype)


def _dense_block_kernel_multi_k(x_ref, w_ref, b_ref, o_ref, *, scale):
    """K-tiled: accumulate directly into the (resident) f32 output block."""
    k = pl.program_id(2)

    @pl.when(k == 0)
    def _():
        o_ref[...] = jnp.zeros_like(o_ref)

    o_ref[...] += jnp.dot(
        x_ref[...], w_ref[...], preferred_element_type=jnp.float32
    )

    @pl.when(k == pl.num_programs(2) - 1)
    def _():
        y = o_ref[...] * scale + b_ref[...]
        o_ref[...] = jnp.where(y >= 0.0, y, 0.2 * y)


# ---------------------------------------------------------------------------
# One-time parameter preparation (cast + pad the weight ONCE, not per call)
# ---------------------------------------------------------------------------
def prepare_dense_block_params(w_t, bias, *, compute_dtype=jnp.bfloat16,
                               tile_n=512, tile_k=2048):
    """w_t: [K, N] (transposed nn.Linear weight), bias: [N].

    Returns a dict with the bf16 tile-padded weight, padded f32 bias row and
    the tiling metadata.  Call this once at parameter-init time.
    """
    K, N = w_t.shape
    tn = min(tile_n, _round_up(N, 128))
    tk = min(tile_k, _round_up(K, 128))
    Kp, Np = _round_up(K, tk), _round_up(N, tn)

    wc = w_t.astype(compute_dtype)
    if (Kp, Np) != (K, N):
        wc = jnp.pad(wc, ((0, Kp - K), (0, Np - N)))

    bias2d = bias.astype(jnp.float32).reshape(1, N)
    if Np != N:
        bias2d = jnp.pad(bias2d, ((0, 0), (0, Np - N)))

    return {
        "w": wc, "bias": bias2d,
        "K": K, "N": N, "Kp": Kp, "Np": Np,
        "tn": tn, "tk": tk, "compute_dtype": compute_dtype,
    }


# ---------------------------------------------------------------------------
# Forward
# ---------------------------------------------------------------------------
def dense_block_forward(x, params, scale, *, tile_b=256):
    """Matches DenseBlock.forward. x: any ndim (flattened to [B, -1])."""
    if x.ndim != 2:
        x = x.reshape(x.shape[0], -1)
    B, K = x.shape
    assert K == params["K"], "weight/input feature mismatch"

    wc, bias2d = params["w"], params["bias"]
    N, Kp, Np = params["N"], params["Kp"], params["Np"]
    tn, tk = params["tn"], params["tk"]

    tb = min(tile_b, _round_up(B, 8))
    Bp = _round_up(B, tb)

    # x is small relative to W; per-call cast/pad of x is negligible traffic.
    xc = x.astype(params["compute_dtype"])
    if (Bp, Kp) != (B, K):
        xc = jnp.pad(xc, ((0, Bp - B), (0, Kp - K)))

    grid = (Bp // tb, Np // tn, Kp // tk)
    n_k = grid[2]

    # Double-buffered per-step VMEM footprint (x tile + w slab + out tile +
    # bias row), with 3x headroom, capped well under v7x's 64 MiB per TC and
    # floored at 16 MiB (v5e scoped default).
    bytes_per_step = 2 * (tb * tk * 2 + tk * tn * 2 + tb * tn * 4 + tn * 4)
    vmem_limit = int(min(48 << 20, max(16 << 20, 3 * bytes_per_step)))

    if n_k == 1:
        kernel = functools.partial(_dense_block_kernel_single_k,
                                   scale=float(scale))
    else:
        kernel = functools.partial(_dense_block_kernel_multi_k,
                                   scale=float(scale))

    out = pl.pallas_call(
        kernel,
        out_shape=jax.ShapeDtypeStruct((Bp, Np), jnp.float32),
        grid_spec=pltpu.PrefetchScalarGridSpec(
            num_scalar_prefetch=0,
            grid=grid,
            in_specs=[
                pl.BlockSpec((tb, tk), lambda b, n, k: (b, k)),   # x tile
                pl.BlockSpec((tk, tn), lambda b, n, k: (k, n)),   # weight slab
                pl.BlockSpec((1, tn), lambda b, n, k: (0, n)),    # bias row
            ],
            out_specs=pl.BlockSpec((tb, tn), lambda b, n, k: (b, n)),
        ),
        compiler_params=pltpu.CompilerParams(
            dimension_semantics=("parallel", "parallel", "arbitrary"),
            vmem_limit_bytes=vmem_limit),
    )(xc, wc, bias2d)

    if (Bp, Np) != (B, N):
        out = out[:B, :N]
    return out


# ---------------------------------------------------------------------------
# Demo / correctness check
# ---------------------------------------------------------------------------
if __name__ == "__main__":
    key = jax.random.PRNGKey(0)
    kx, kw, kb = jax.random.split(key, 3)

    # Small shapes consistent with the module: 4-D input gets flattened.
    B, C, H, W = 2, 4, 16, 16          # -> in_channels = 4*16*16 = 1024
    in_channels = C * H * W
    out_channels = 128
    wscale_gain = np.sqrt(2.0)
    # WScaleLayer(kernel_size=1): fan_in = in_channels * 1 * 1
    scale = float(wscale_gain / np.sqrt(in_channels))

    x = jax.random.normal(kx, (B, C, H, W), dtype=jnp.float32)
    # nn.Linear weight is [out, in]; the kernel uses the transposed [in, out].
    w_torch_layout = jax.random.normal(kw, (out_channels, in_channels),
                                       dtype=jnp.float32) * 0.05
    w_t = w_torch_layout.T
    # WScaleLayer bias initializes to zeros; use a small nonzero bias to
    # exercise the bias-broadcast path (it is a trainable parameter anyway).
    bias = 0.1 * jax.random.normal(kb, (out_channels,), dtype=jnp.float32)

    # One-time parameter prep (bf16 cast + tile padding) -- NOT per-call work.
    params = prepare_dense_block_params(w_t, bias)

    out = dense_block_forward(x, params, scale)
    out = jax.block_until_ready(out)

    # Pure-JAX reference with the same bf16 matmul operands / f32 accumulation.
    x2 = x.reshape(B, -1)
    ref = jnp.dot(x2.astype(jnp.bfloat16), w_t.astype(jnp.bfloat16),
                  preferred_element_type=jnp.float32)
    ref = ref * scale + bias.reshape(1, -1)
    ref = jnp.where(ref >= 0.0, ref, 0.2 * ref)
    np.testing.assert_allclose(np.asarray(out), np.asarray(ref),
                               rtol=5e-3, atol=5e-3)

    print("KERNEL_OK")
</pallas_src>

<mosaic_0001>
module attributes {stable_mosaic.version = 11 : i64} {
  func.func @_dense_block_kernel_single_k(%arg0: i32, %arg1: i32, %arg2: i32, %arg3: memref<8x1024xbf16, #tpu.memory_space<vmem>>, %arg4: memref<1024x128xbf16, #tpu.memory_space<vmem>>, %arg5: memref<1x128xf32, #tpu.memory_space<vmem>>, %arg6: memref<8x128xf32, #tpu.memory_space<vmem>>) attributes {dimension_semantics = [#tpu.dimension_semantics<parallel>, #tpu.dimension_semantics<parallel>, #tpu.dimension_semantics<arbitrary>], iteration_bounds = array<i64: 1, 1, 1>, scalar_prefetch = 0 : i64, scratch_operands = 0 : i64, tpu.core_type = #tpu.core_type<tc>, window_params = [{transform_indices = @transform_0, window_bounds = array<i64: 8, 1024>}, {transform_indices = @transform_1, window_bounds = array<i64: 1024, 128>}, {transform_indices = @transform_2, window_bounds = array<i64: 1, 128>}, {transform_indices = @transform_3, window_bounds = array<i64: 8, 128>}]} {
    %c0 = arith.constant 0 : index
    %c0_0 = arith.constant 0 : index
    %0 = vector.load %arg3[%c0, %c0_0] : memref<8x1024xbf16, #tpu.memory_space<vmem>>, vector<8x1024xbf16>
    %c0_1 = arith.constant 0 : index
    %c0_2 = arith.constant 0 : index
    %1 = vector.load %arg4[%c0_1, %c0_2] : memref<1024x128xbf16, #tpu.memory_space<vmem>>, vector<1024x128xbf16>
    %cst = arith.constant dense<0.000000e+00> : vector<8x128xf32>
    %2 = tpu.matmul %0, %1, %cst {dimension_numbers = #tpu.dot_dimension_numbers<[1], [0], [0], [1], [0, 0, 1, 1], [], []>} : vector<8x1024xbf16>, vector<1024x128xbf16>, vector<8x128xf32> -> vector<8x128xf32>
    %cst_3 = arith.constant 0.0441941731 : f32
    %3 = vector.broadcast %cst_3 : f32 to vector<8x128xf32>
    %4 = arith.mulf %2, %3 : vector<8x128xf32>
    %c0_4 = arith.constant 0 : index
    %c0_5 = arith.constant 0 : index
    %5 = vector.load %arg5[%c0_4, %c0_5] : memref<1x128xf32, #tpu.memory_space<vmem>>, vector<1x128xf32>
    %6 = vector.broadcast %5 : vector<1x128xf32> to vector<8x128xf32>
    %7 = arith.addf %4, %6 : vector<8x128xf32>
    %cst_6 = arith.constant 0.000000e+00 : f32
    %8 = vector.broadcast %cst_6 : f32 to vector<8x128xf32>
    %9 = arith.cmpf oge, %7, %8 : vector<8x128xf32>
    %cst_7 = arith.constant 2.000000e-01 : f32
    %10 = vector.broadcast %cst_7 : f32 to vector<8x128xf32>
    %11 = arith.mulf %10, %7 : vector<8x128xf32>
    %12 = arith.select %9, %7, %11 : vector<8x128xi1>, vector<8x128xf32>
    %c0_8 = arith.constant 0 : index
    %c0_9 = arith.constant 0 : index
    %13 = vector.load %arg6[%c0_8, %c0_9] : memref<8x128xf32, #tpu.memory_space<vmem>>, vector<8x128xf32>
    tpu.vector_store %arg6[%c0_8, %c0_9], %12 {strides = array<i32>} : memref<8x128xf32, #tpu.memory_space<vmem>>, vector<8x128xf32>,
    return
  }
  func.func @transform_0(%arg0: i32, %arg1: i32, %arg2: i32) -> (i32, i32) {
    %c0_i32 = arith.constant 0 : i32
    return %arg0, %arg2 : i32, i32
  }
  func.func @transform_1(%arg0: i32, %arg1: i32, %arg2: i32) -> (i32, i32) {
    %c0_i32 = arith.constant 0 : i32
    return %arg2, %arg1 : i32, i32
  }
  func.func @transform_2(%arg0: i32, %arg1: i32, %arg2: i32) -> (i32, i32) {
    %c0_i32 = arith.constant 0 : i32
    %c0_i32_0 = arith.constant 0 : i32
    return %c0_i32, %arg1 : i32, i32
  }
  func.func @transform_3(%arg0: i32, %arg1: i32, %arg2: i32) -> (i32, i32) {
    %c0_i32 = arith.constant 0 : i32
    return %arg0, %arg1 : i32, i32
  }
}

</mosaic_0001>

<bundles_post_ra>
// kernel: tpu_custom_call.1
= control target key start
LH: loop header
LB: loop body
LE: loop exit
PB: predicated region body
PF: predicated region fallthrough
CT: control target
= control target key end

     0   :  { %8 = vsyncpa [#allocation3], 0  ;;  %s1116_s0 = inlined_call_operand.hbm [shape: bf16[8,1024], index: 0, kind: input, shape index: {}]   ;;  %s1117_s1 = inlined_call_operand.hbm [shape: bf16[1024,128], index: 1, kind: input, shape index: {}]   ;;  %s1118_s2 = inlined_call_operand.vmem [shape: f32[1,128], index: 2, kind: input, shape index: {}]   ;;  %s1119_s3 = inlined_call_operand.hbm [shape: f32[8,128], index: 3, kind: output, shape index: {}]  }
   0x1   :  { %9 = vsyncpa [#allocation6], 0 }
   0x2   :  { %10 = vsyncpa [#allocation4], 0  ;;  %s1079_s12 = smov [#allocation2]   ;;  %s1080_s14 = smov [#allocation5]  }
   0x3   :  { %s17_s13 = sshll.u32 %s1079_s12, 4  ;;  %s26_s15 = sshll.u32 %s1080_s14, 4  ;;  %s18_s13 = int_to_ptr.vmem [resolvable:$true] %s17_s13  ;;  %s27_s15 = int_to_ptr.vmem [resolvable:$true] %s26_s15 }
   0x4   :  { %s1021_s16 = scalar_lea.vmem %s18_s13, 512  ;;  %p1026_p1 = scmp.lt.s32.totalorder %s18_s13, %s18_s13 }
   0x5   :  { %p1022_p0 = scmp.ne.s32.totalorder %s18_s13, %s1021_s16  ;;  %p1027_p2 = scmp.lt.s32.totalorder %s1021_s16, %s1021_s16 }
   0x7   :  { %p1028_p3 = por %p1027_p2, %p1026_p1 }
   0x9   :  { %p1029_p4 = pnand %p1028_p3, %p1022_p0 }
   0xb   :  { %1032 = shalt.err (!%p1029_p4)
}
   0xc   :  { %20 = dma.hbm_to_vmem [thread:$0]  %s1116_s0, 512, %s18_s13, [#allocation3]  }
   0xd   :  { %s1041_s19 = scalar_lea.vmem %s27_s15, 8192  ;;  %p1046_p6 = scmp.lt.s32.totalorder %s27_s15, %s27_s15 }
   0xe   :  { %p1042_p5 = scmp.ne.s32.totalorder %s27_s15, %s1041_s19  ;;  %p1047_p7 = scmp.lt.s32.totalorder %s1041_s19, %s1041_s19 }
  0x10   :  { %p1048_p8 = por %p1047_p7, %p1046_p6 }
  0x12   :  { %p1049_p9 = pnand %p1048_p8, %p1042_p5 }
  0x14   :  { %1052 = shalt.err (!%p1049_p9)
}
  0x15   :  { %s1081_s20 = smov 64   ;;  %s1082_s21 = smov 4  }
  0x16   :  { %32 = dma.hbm_to_vmem [thread:$0]  %s1117_s1, 8192, %s27_s15, [#allocation6], %s1081_s20, %s1081_s20, %s1082_s21  }
  0x17   :  { %1073 = dma.done.wait [#allocation3], 512  }
  0x18   :  { %1074 = vsyncadd [#allocation3], 4294966784 }
  0x19   :  { %1075 = dma.done.wait [#allocation6], 8192  }
  0x1a   :  { %1076 = vsyncadd [#allocation6], 4294959104  ;;  %v941_v0 = vld [vmem:[#allocation5 + $0x78] sm:$0xff]   ;;  %v945_v4 = vld [vmem:[#allocation5 + $0x70] sm:$0xff]   ;;  %s1083_s24 = smov [#allocation7]  }
  0x1b   :  { %v942_v1 = vld [vmem:[#allocation5 + $0xf8] sm:$0xff]   ;;  %848 = vmatprep.subr.bf16.mxu0 %v941_v0  ;;  %v946_v5 = vld [vmem:[#allocation5 + $0xf0] sm:$0xff]   ;;  %v949_v8 = vld [vmem:[#allocation5 + $0x68] sm:$0xff]   ;;  %s765_s25 = sshll.u32 %s1083_s24, 4  ;;  %s766_s25 = int_to_ptr.vmem [resolvable:$true] %s765_s25 }
  0x1c   :  { %v943_v2 = vld [vmem:[#allocation5 + $0x38] sm:$0xff]   ;;  %870 = vmatprep.subr.bf16.mxu1 %v942_v1  ;;  %v947_v6 = vld [vmem:[#allocation5 + $0x30] sm:$0xff]   ;;  %v950_v9 = vld [vmem:[#allocation5 + $0xe8] sm:$0xff]   ;;  %s1053_s26 = scalar_lea.vmem %s766_s25, 128  ;;  %p1058_p11 = scmp.lt.s32.totalorder %s766_s25, %s766_s25 }
  0x1d   :  { %v944_v3 = vld [vmem:[#allocation5 + $0xb8] sm:$0xff]   ;;  %849 = vmatpush3.bf16.msra.mxu0 %v943_v2  ;;  %v948_v7 = vld [vmem:[#allocation5 + $0xb0] sm:$0xff]   ;;  %v951_v10 = vld [vmem:[#allocation5 + $0x28] sm:$0xff]   ;;  %p1054_p10 = scmp.ne.s32.totalorder %s766_s25, %s1053_s26  ;;  %p1059_p12 = scmp.lt.s32.totalorder %s1053_s26, %s1053_s26 }
  0x1e   :  { %871 = vmatpush3.bf16.msra.mxu1 %v944_v3  ;;  %850 = vmatprep.subr.bf16.mxu0 %v945_v4  ;;  %v952_v11 = vld [vmem:[#allocation5 + $0xa8] sm:$0xff]   ;;  %v953_v12 = vld [vmem:[#allocation5 + $0x60] sm:$0xff]   ;;  %v957_v16 = vld [vmem:[#allocation5 + $0x58] sm:$0xff]  }
  0x1f   :  { %872 = vmatprep.subr.bf16.mxu1 %v946_v5  ;;  %v954_v13 = vld [vmem:[#allocation5 + $0xe0] sm:$0xff]   ;;  %v958_v17 = vld [vmem:[#allocation5 + $0xd8] sm:$0xff]   ;;  %v961_v20 = vld [vmem:[#allocation5 + $0x50] sm:$0xff]   ;;  %p1060_p13 = por %p1059_p12, %p1058_p11 }
  0x20   :  { %v955_v14 = vld [vmem:[#allocation5 + $0x20] sm:$0xff]   ;;  %v959_v18 = vld [vmem:[#allocation5 + $0x18] sm:$0xff]   ;;  %v962_v21 = vld [vmem:[#allocation5 + $0xd0] sm:$0xff]  }
  0x21   :  { %851 = vmatpush3.bf16.msra.mxu0 %v947_v6  ;;  %v956_v15 = vld [vmem:[#allocation5 + $0xa0] sm:$0xff]   ;;  %v960_v19 = vld [vmem:[#allocation5 + $0x98] sm:$0xff]   ;;  %v963_v22 = vld [vmem:[#allocation5 + $0x10] sm:$0xff]   ;;  %p1061_p0 = pnand %p1060_p13, %p1054_p10 }
  0x22   :  { %873 = vmatpush3.bf16.msra.mxu1 %v948_v7  ;;  %852 = vmatprep.subr.bf16.mxu0 %v949_v8  ;;  %v964_v23 = vld [vmem:[#allocation5 + $0x90] sm:$0xff]   ;;  %v965_v24 = vld [vmem:[#allocation5 + $0x48] sm:$0xff]   ;;  %v969_v28 = vld [vmem:[#allocation5 + $0x40] sm:$0xff]  }
  0x23   :  { %874 = vmatprep.subr.bf16.mxu1 %v950_v9  ;;  %v966_v25 = vld [vmem:[#allocation5 + $0xc8] sm:$0xff]   ;;  %v970_v29 = vld [vmem:[#allocation5 + $0xc0] sm:$0xff]   ;;  %v977_v38 = vld [vmem:[#allocation5 + $0x178] sm:$0xff]  }
  0x24   :  { %v967_v26 = vld [vmem:[#allocation5 + $0x8] sm:$0xff]   ;;  %v971_v30 = vld [vmem:[#allocation5] sm:$0xff]   ;;  %v978_v39 = vld [vmem:[#allocation5 + $0x1f8] sm:$0xff]  }
  0x25   :  { %853 = vmatpush3.bf16.msra.mxu0 %v951_v10  ;;  %v968_v27 = vld [vmem:[#allocation5 + $0x88] sm:$0xff]   ;;  %v972_v31 = vld [vmem:[#allocation5 + $0x80] sm:$0xff]   ;;  %v979_v40 = vld [vmem:[#allocation5 + $0x138] sm:$0xff]  }
  0x26   :  { %875 = vmatpush3.bf16.msra.mxu1 %v952_v11  ;;  %854 = vmatprep.subr.bf16.mxu0 %v953_v12  ;;  %v42_v32 = vld [vmem:[#allocation2] sm:$0xff]  ;;  %v43_v33 = vld [vmem:[#allocation2 + $0x8] sm:$0xff]  ;;  %v980_v41 = vld [vmem:[#allocation5 + $0x1b8] sm:$0xff]  }
  0x27   :  { %876 = vmatprep.subr.bf16.mxu1 %v954_v13  ;;  %v775_v34 = vcombine.low %v42_v32, %v42_v32  ;;  %v776_v35 = vcombine.high %v42_v32, %v42_v32  ;;  %v777_v36 = vcombine.low %v43_v33, %v43_v33  ;;  %v778_v37 = vcombine.high %v43_v33, %v43_v33  ;;  %v981_v42 = vld [vmem:[#allocation5 + $0x170] sm:$0xff]   ;;  %v985_v46 = vld [vmem:[#allocation5 + $0x168] sm:$0xff]   ;;  %v989_v50 = vld [vmem:[#allocation5 + $0x160] sm:$0xff]  }
  0x28   :  { %v982_v43 = vld [vmem:[#allocation5 + $0x1f0] sm:$0xff]   ;;  %v986_v47 = vld [vmem:[#allocation5 + $0x1e8] sm:$0xff]   ;;  %v990_v51 = vld [vmem:[#allocation5 + $0x1e0] sm:$0xff]  }
  0x29   :  { %855 = vmatpush3.bf16.msra.mxu0 %v955_v14  ;;  %618 = vmatprep.mubr.bf16.mxu0 %v776_v35  ;;  %v983_v44 = vld [vmem:[#allocation5 + $0x130] sm:$0xff]   ;;  %v987_v48 = vld [vmem:[#allocation5 + $0x128] sm:$0xff]   ;;  %v991_v52 = vld [vmem:[#allocation5 + $0x120] sm:$0xff]  }
  0x2a   :  { %877 = vmatpush3.bf16.msra.mxu1 %v956_v15  ;;  %856 = vmatprep.subr.bf16.mxu0 %v957_v16  ;;  %v984_v45 = vld [vmem:[#allocation5 + $0x1b0] sm:$0xff]   ;;  %v988_v49 = vld [vmem:[#allocation5 + $0x1a8] sm:$0xff]   ;;  %v992_v53 = vld [vmem:[#allocation5 + $0x1a0] sm:$0xff]  }
  0x2b   :  { %878 = vmatprep.subr.bf16.mxu1 %v958_v17  ;;  %658 = vmatprep.mubr.bf16.mxu1 %v778_v37  ;;  %v993_v54 = vld [vmem:[#allocation5 + $0x158] sm:$0xff]   ;;  %v997_v58 = vld [vmem:[#allocation5 + $0x150] sm:$0xff]   ;;  %v1001_v62 = vld [vmem:[#allocation5 + $0x148] sm:$0xff]  }
  0x2c   :  { %v994_v55 = vld [vmem:[#allocation5 + $0x1d8] sm:$0xff]   ;;  %v998_v59 = vld [vmem:[#allocation5 + $0x1d0] sm:$0xff]   ;;  %v1002_v63 = vld [vmem:[#allocation5 + $0x1c8] sm:$0xff]  }
  0x2d   :  { %857 = vmatpush3.bf16.msra.mxu0 %v959_v18  ;;  %v995_v56 = vld [vmem:[#allocation5 + $0x118] sm:$0xff]   ;;  %v999_v60 = vld [vmem:[#allocation5 + $0x110] sm:$0xff]   ;;  %v1003_v0 = vld [vmem:[#allocation5 + $0x108] sm:$0xff]  }
  0x2e   :  { %879 = vmatpush3.bf16.msra.mxu1 %v960_v19  ;;  %858 = vmatprep.subr.bf16.mxu0 %v961_v20  ;;  %v996_v57 = vld [vmem:[#allocation5 + $0x198] sm:$0xff]   ;;  %v1000_v61 = vld [vmem:[#allocation5 + $0x190] sm:$0xff]   ;;  %v1004_v1 = vld [vmem:[#allocation5 + $0x188] sm:$0xff]  }
  0x2f   :  { %880 = vmatprep.subr.bf16.mxu1 %v962_v21  ;;  %v1005_v2 = vld [vmem:[#allocation5 + $0x140] sm:$0xff]   ;;  %v44_v6 = vld [vmem:[#allocation2 + $0x10] sm:$0xff]  ;;  %v45_v9 = vld [vmem:[#allocation2 + $0x18] sm:$0xff] }
  0x30   :  { %v1006_v3 = vld [vmem:[#allocation5 + $0x1c0] sm:$0xff]   ;;  %v779_v7 = vcombine.low %v44_v6, %v44_v6  ;;  %v780_v8 = vcombine.high %v44_v6, %v44_v6  ;;  %v781_v10 = vcombine.low %v45_v9, %v45_v9  ;;  %v782_v11 = vcombine.high %v45_v9, %v45_v9 }
  0x31   :  { %859 = vmatpush3.bf16.msra.mxu0 %v963_v22  ;;  %v1007_v4 = vld [vmem:[#allocation5 + $0x100] sm:$0xff]  }
  0x32   :  { %881 = vmatpush3.bf16.msra.mxu1 %v964_v23  ;;  %860 = vmatprep.subr.bf16.mxu0 %v965_v24  ;;  %v1008_v5 = vld [vmem:[#allocation5 + $0x180] sm:$0xff]  }
  0x33   :  { %882 = vmatprep.subr.bf16.mxu1 %v966_v25  ;;  %v847_v35 = vld [vmem:[%s1118_s2] ss:$0 sm:$0xff] }
  0x35   :  { %861 = vmatpush3.bf16.msra.mxu0 %v967_v26 }
  0x36   :  { %883 = vmatpush3.bf16.msra.mxu1 %v968_v27  ;;  %862 = vmatprep.subr.bf16.mxu0 %v969_v28 }
  0x37   :  { %884 = vmatprep.subr.bf16.mxu1 %v970_v29 }
  0x39   :  { %863 = vmatpush3.bf16.msra.mxu0 %v971_v30 }
  0x3a   :  { %885 = vmatpush3.bf16.msra.mxu1 %v972_v31  ;;  %892 = vmatprep.subr.bf16.mxu0 %v977_v38 }
  0x3b   :  { %914 = vmatprep.subr.bf16.mxu1 %v978_v39 }
  0x3c   :  { %619 = vmatmul.mubr.bf16.vlgmr.msra.gmra.mxu0 %v775_v34 }
  0x3d   :  { %659 = vmatmul.mubr.bf16.vlgmr.msra.gmra.mxu1 %v777_v36  ;;  %893 = vmatpush3.bf16.msra.mxu0 %v979_v40 }
  0x3e   :  { %915 = vmatpush3.bf16.msra.mxu1 %v980_v41  ;;  %894 = vmatprep.subr.bf16.mxu0 %v981_v42 }
  0x3f   :  { %916 = vmatprep.subr.bf16.mxu1 %v982_v43  ;;  %698 = vmatprep.mubr.bf16.mxu0 %v780_v8 }
  0x40   :  { %738 = vmatprep.mubr.bf16.mxu1 %v782_v11 }
  0x41   :  { %895 = vmatpush3.bf16.msra.mxu0 %v983_v44 }
  0x42   :  { %917 = vmatpush3.bf16.msra.mxu1 %v984_v45  ;;  %896 = vmatprep.subr.bf16.mxu0 %v985_v46 }
  0x43   :  { %918 = vmatprep.subr.bf16.mxu1 %v986_v47 }
  0x45   :  { %897 = vmatpush3.bf16.msra.mxu0 %v987_v48 }
  0x46   :  { %919 = vmatpush3.bf16.msra.mxu1 %v988_v49  ;;  %898 = vmatprep.subr.bf16.mxu0 %v989_v50 }
  0x47   :  { %920 = vmatprep.subr.bf16.mxu1 %v990_v51 }
  0x49   :  { %899 = vmatpush3.bf16.msra.mxu0 %v991_v52 }
  0x4a   :  { %921 = vmatpush3.bf16.msra.mxu1 %v992_v53  ;;  %900 = vmatprep.subr.bf16.mxu0 %v993_v54 }
  0x4b   :  { %922 = vmatprep.subr.bf16.mxu1 %v994_v55 }
  0x4d   :  { %901 = vmatpush3.bf16.msra.mxu0 %v995_v56 }
  0x4e   :  { %923 = vmatpush3.bf16.msra.mxu1 %v996_v57  ;;  %902 = vmatprep.subr.bf16.mxu0 %v997_v58 }
  0x4f   :  { %924 = vmatprep.subr.bf16.mxu1 %v998_v59 }
  0x51   :  { %903 = vmatpush3.bf16.msra.mxu0 %v999_v60 }
  0x52   :  { %925 = vmatpush3.bf16.msra.mxu1 %v1000_v61  ;;  %904 = vmatprep.subr.bf16.mxu0 %v1001_v62 }
  0x53   :  { %926 = vmatprep.subr.bf16.mxu1 %v1002_v63 }
  0x55   :  { %905 = vmatpush3.bf16.msra.mxu0 %v1003_v0 }
  0x56   :  { %927 = vmatpush3.bf16.msra.mxu1 %v1004_v1  ;;  %906 = vmatprep.subr.bf16.mxu0 %v1005_v2 }
  0x57   :  { %928 = vmatprep.subr.bf16.mxu1 %v1006_v3 }
  0x59   :  { %907 = vmatpush3.bf16.msra.mxu0 %v1007_v4 }
  0x5a   :  { %929 = vmatpush3.bf16.msra.mxu1 %v1008_v5 }
  0x5c   :  { %699 = vmatmul.mubr.bf16.vlgmr.msra.gmra.mxu0 %v779_v7 }
  0x5d   :  { %739 = vmatmul.mubr.bf16.vlgmr.msra.gmra.mxu1 %v781_v10 }
  0xfc   :  { %v864_v12 = vpop.f32.mrf.mxu0 }
  0xfd   :  { %v886_v13 = vpop.f32.mrf.mxu1 }
  0xfe   :  { %v865_v14 = vpop.f32.mrf.mxu0 }
  0xff   :  { %v887_v15 = vpop.f32.mrf.mxu1  ;;  %v866_v20 = vadd.f32 %v865_v14, %v864_v12 }
 0x100   :  { %v867_v16 = vpop.f32.mrf.mxu0  ;;  %v888_v21 = vadd.f32 %v887_v15, %v886_v13 }
 0x101   :  { %v889_v17 = vpop.f32.mrf.mxu1 }
 0x102   :  { %v868_v18 = vpop.f32.mrf.mxu0  ;;  %v661_v26 = vadd.f32 %v888_v21, %v866_v20 }
 0x103   :  { %v890_v19 = vpop.f32.mrf.mxu1 }
 0x11c   :  { %v908_v22 = vpop.f32.mrf.mxu0 }
 0x11d   :  { %v930_v23 = vpop.f32.mrf.mxu1 }
 0x11e   :  { %v909_v24 = vpop.f32.mrf.mxu0 }
 0x11f   :  { %v931_v25 = vpop.f32.mrf.mxu1  ;;  %v910_v27 = vadd.f32 %v909_v24, %v908_v22 }
 0x120   :  { %v911_v28 = vpop.f32.mrf.mxu0  ;;  %v932_v31 = vadd.f32 %v931_v25, %v930_v23 }
 0x121   :  { %v933_v29 = vpop.f32.mrf.mxu1  ;;  %v701_v30 = vadd.f32 %v910_v27, %v661_v26 }
 0x122   :  { %v912_v32 = vpop.f32.mrf.mxu0 }
 0x123   :  { %v934_v33 = vpop.f32.mrf.mxu1  ;;  %v741_v34 = vadd.f32 %v932_v31, %v701_v30 }
 0x125   :  { %v746_v36 = vmul.f32 0.044194173, %v741_v34 }
 0x127   :  { %v754_v37 = vadd.f32 %v847_v35, %v746_v36 }
 0x129   :  { %vm755_vm0 = vcmp.ge.f32.partialorder %v754_v37, 0.0  ;;  %v756_v38 = vmul.f32 0.2, %v754_v37 }
 0x12b   :  { %v757_v39 = vsel %vm755_vm0, %v754_v37, %v756_v38 }
 0x12c   :  { %758 = vst [vmem:[#allocation7] sm:$0xff] %v757_v39 }
 0x12d   :  { %1064 = shalt.err (!%p1061_p0)
}
 0x12e   :  { %768 = dma.vmem_to_hbm [thread:$0]  %s766_s25, 128, %s1119_s3, [#allocation4]  }
 0x12f   :  { %1077 = dma.done.wait [#allocation4], 128  }
 0x130   :  { %1078 = vsyncadd [#allocation4], 4294967168 }
 0x131   :  { %772 = vsyncpa [#allocation3], 1 }
 0x132   :  { %773 = vsyncpa [#allocation6], 1 }
 0x133   :  { %774 = vsyncpa [#allocation4], 1 }

</bundles_post_ra>
